<compile_context>
chip_gen: v6e
topology: v6e:2x2x1
jax: 0.10.0
libtpu: 0.0.40
codegen_flags: <defaults>
</compile_context>

<pallas_src>
import functools

import jax
import jax.numpy as jnp
import numpy as np
from jax.experimental import pallas as pl
from jax.experimental.pallas import tpu as pltpu

# ----------------------------- config -----------------------------
DIM = 32        # model dim
HEADS = 4
DIM_HEAD = 16
INNER = HEADS * DIM_HEAD        # 64
SEQ = 8
BATCH = 2
LN_EPS = 1e-5                   # torch F.layer_norm default
L2_EPS = 1e-12                  # torch F.normalize default


def attention_kernel(x_ref, ln_g_ref, ln_b_ref, qg_ref, kg_ref, wqkv_ref,
                     wo_ref, o_ref, *, heads, dim_head):
    """Fused LayerNorm -> qkv proj -> qk-RMSNorm -> softmax(QK^T)V -> out proj
    for ONE batch element (grid axis b is 'parallel')."""
    inner = heads * dim_head

    x = x_ref[...][0].astype(jnp.float32)                     # (N, D)

    # ---- LayerNorm over last dim (torch F.layer_norm semantics) ----
    mean = jnp.mean(x, axis=-1, keepdims=True)
    var = jnp.mean((x - mean) ** 2, axis=-1, keepdims=True)
    xn = (x - mean) * jax.lax.rsqrt(var + LN_EPS)
    xn = xn * ln_g_ref[...] + ln_b_ref[...]                    # (N, D)

    # ---- fused q|k|v projection: one lane-dense MXU pass ----
    qkv = jnp.dot(xn, wqkv_ref[...],
                  preferred_element_type=jnp.float32)          # (N, 3*INNER)

    # ---- one-time head split: lane axis -> three (H, N, d) slabs ----
    def split_heads(base):
        return jnp.stack(
            [qkv[:, base + h * dim_head: base + (h + 1) * dim_head]
             for h in range(heads)], axis=0)                   # (H, N, d)

    q = split_heads(0)
    k = split_heads(inner)
    v = split_heads(2 * inner)

    # ---- head-batched RMSNorm (F.normalize semantics); gammas carry sqrt(d) ----
    def l2norm(t):
        nrm = jnp.sqrt(jnp.sum(t * t, axis=-1, keepdims=True))
        return t / jnp.maximum(nrm, L2_EPS)

    q = l2norm(q) * qg_ref[...][:, None, :]                    # single hoisted broadcast
    k = l2norm(k) * kg_ref[...][:, None, :]

    # ---- head-batched scores + softmax (module applies no extra 1/sqrt(d)) ----
    dots = jnp.einsum('hid,hjd->hij', q, k,
                      preferred_element_type=jnp.float32)      # (H, N, N)
    dots = dots - jnp.max(dots, axis=-1, keepdims=True)
    e = jnp.exp(dots)
    # approx reciprocal: EUP slot (free here); sole source of the 5e-3 rtol.
    attn = e * pl.reciprocal(jnp.sum(e, axis=-1, keepdims=True), approx=True)

    out = jnp.einsum('hij,hjd->hid', attn, v,
                     preferred_element_type=jnp.float32)       # (H, N, d)

    # ---- merge heads onto the lane axis, single K=INNER output projection ----
    out = jnp.concatenate([out[h] for h in range(heads)], axis=-1)   # (N, INNER)
    o = jnp.dot(out, wo_ref[...], preferred_element_type=jnp.float32)  # (N, D)

    # TODO(synk): optional `context`, `mask`, `attn_mask` args of the PyTorch
    # forward are not plumbed through (defaults None); dropout is identity (p=0).
    o_ref[...] = o[None, :, :].astype(o_ref.dtype)


def prepare_attention_params(params):
    """One-time parameter packing/folding (init time, NOT the per-call hot path)."""
    ln_g, ln_b, qg, kg, wq, wkv, wo = params
    dim_head = qg.shape[-1]
    wqkv = jnp.concatenate([wq, wkv], axis=-1)          # (D, 3*INNER) = [Wq | Wk | Wv]
    scale = dim_head ** 0.5                             # fold sqrt(d) into the gammas
    return (ln_g.astype(jnp.float32),
            ln_b.astype(jnp.float32),
            (qg * scale).astype(jnp.float32),
            (kg * scale).astype(jnp.float32),
            wqkv.astype(jnp.float32),
            wo.astype(jnp.float32))


@jax.jit
def attention_forward(x, prepared):
    ln_g, ln_b, qg, kg, wqkv, wo = prepared
    B, N, D = x.shape
    heads, dim_head = qg.shape
    inner = heads * dim_head

    kernel = functools.partial(attention_kernel, heads=heads, dim_head=dim_head)
    const2 = lambda b: (0, 0)   # weights: same block every step -> fetched once

    out = pl.pallas_call(
        kernel,
        grid=(B,),
        out_shape=jax.ShapeDtypeStruct((B, N, D), x.dtype),
        in_specs=[
            pl.BlockSpec((1, N, D), lambda b: (b, 0, 0)),     # x
            pl.BlockSpec((1, D), const2),                     # ln gamma
            pl.BlockSpec((1, D), const2),                     # ln beta
            pl.BlockSpec((heads, dim_head), const2),          # q gamma (pre-scaled)
            pl.BlockSpec((heads, dim_head), const2),          # k gamma (pre-scaled)
            pl.BlockSpec((D, 3 * inner), const2),             # fused Wqkv
            pl.BlockSpec((inner, D), const2),                 # Wout
        ],
        out_specs=pl.BlockSpec((1, N, D), lambda b: (b, 0, 0)),
        compiler_params=pltpu.CompilerParams(
            dimension_semantics=("parallel",)),               # v7x: 2 TCs split batch
    )(x, ln_g, ln_b, qg, kg, wqkv, wo)
    return out


# ----------------------------- pure-JAX reference -----------------------------
def attention_ref(x, params):
    ln_g, ln_b, qg, kg, wq, wkv, wo = params
    mean = jnp.mean(x, axis=-1, keepdims=True)
    var = jnp.mean((x - mean) ** 2, axis=-1, keepdims=True)
    xn = (x - mean) * jax.lax.rsqrt(var + LN_EPS) * ln_g[0] + ln_b[0]
    q = xn @ wq                                  # (B, N, INNER)
    kv = xn @ wkv
    k, v = kv[..., :INNER], kv[..., INNER:]
    resh = lambda t: jnp.transpose(t.reshape(t.shape[0], t.shape[1], HEADS, DIM_HEAD),
                                   (0, 2, 1, 3))           # (B, H, N, d)
    q, k, v = resh(q), resh(k), resh(v)
    l2 = lambda t: t / jnp.maximum(jnp.linalg.norm(t, axis=-1, keepdims=True), L2_EPS)
    scale = DIM_HEAD ** 0.5
    q = l2(q) * scale * qg[None, :, None, :]
    k = l2(k) * scale * kg[None, :, None, :]
    dots = jnp.einsum('bhid,bhjd->bhij', q, k)
    attn = jax.nn.softmax(dots, axis=-1)
    out = jnp.einsum('bhij,bhjd->bhid', attn, v)
    out = jnp.transpose(out, (0, 2, 1, 3)).reshape(x.shape[0], x.shape[1], INNER)
    return out @ wo


if __name__ == "__main__":
    key = jax.random.PRNGKey(0)
    kx, k1, k2, k3, k4, k5 = jax.random.split(key, 6)

    x = jax.random.normal(kx, (BATCH, SEQ, DIM), dtype=jnp.float32)

    # deterministic parameter init (shapes per Attention.__init__)
    ln_g = jnp.ones((1, DIM), jnp.float32) + 0.05 * jax.random.normal(k1, (1, DIM))
    ln_b = jnp.zeros((1, DIM), jnp.float32)
    qg = jnp.ones((HEADS, DIM_HEAD), jnp.float32) + 0.05 * jax.random.normal(k2, (HEADS, DIM_HEAD))
    kg = jnp.ones((HEADS, DIM_HEAD), jnp.float32) + 0.05 * jax.random.normal(k3, (HEADS, DIM_HEAD))
    wq = 0.05 * jax.random.normal(k4, (DIM, INNER), dtype=jnp.float32)
    wkv = 0.05 * jax.random.normal(k5, (DIM, 2 * INNER), dtype=jnp.float32)
    wo = 0.05 * jax.random.normal(jax.random.fold_in(key, 7), (INNER, DIM), dtype=jnp.float32)

    params = (ln_g, ln_b, qg, kg, wq, wkv, wo)

    # one-time packing (init time) -> hot path gets pre-packed weights only
    prepared = prepare_attention_params(params)

    out = jax.block_until_ready(attention_forward(x, prepared))
    ref = jax.block_until_ready(attention_ref(x, params))

    # rtol 5e-3 admits the approx=True EUP reciprocal in the softmax denominator.
    np.testing.assert_allclose(np.asarray(out), np.asarray(ref), rtol=5e-3, atol=5e-4)

    print("KERNEL_OK")
</pallas_src>

<mosaic_0001>
module attributes {stable_mosaic.version = 11 : i64} {
  func.func @attention_kernel(%arg0: i32, %arg1: memref<1x8x32xf32, #tpu.memory_space<vmem>>, %arg2: memref<1x32xf32, #tpu.memory_space<vmem>>, %arg3: memref<1x32xf32, #tpu.memory_space<vmem>>, %arg4: memref<4x16xf32, #tpu.memory_space<vmem>>, %arg5: memref<4x16xf32, #tpu.memory_space<vmem>>, %arg6: memref<32x192xf32, #tpu.memory_space<vmem>>, %arg7: memref<64x32xf32, #tpu.memory_space<vmem>>, %arg8: memref<1x8x32xf32, #tpu.memory_space<vmem>>) attributes {dimension_semantics = [#tpu.dimension_semantics<parallel>], iteration_bounds = array<i64: 2>, scalar_prefetch = 0 : i64, scratch_operands = 0 : i64, tpu.core_type = #tpu.core_type<tc>, window_params = [{transform_indices = @transform_0, window_bounds = array<i64: 1, 8, 32>}, {pipeline_mode = #tpu.pipeline_mode<synchronous>, transform_indices = @transform_1, window_bounds = array<i64: 1, 32>}, {pipeline_mode = #tpu.pipeline_mode<synchronous>, transform_indices = @transform_2, window_bounds = array<i64: 1, 32>}, {pipeline_mode = #tpu.pipeline_mode<synchronous>, transform_indices = @transform_3, window_bounds = array<i64: 4, 16>}, {pipeline_mode = #tpu.pipeline_mode<synchronous>, transform_indices = @transform_4, window_bounds = array<i64: 4, 16>}, {pipeline_mode = #tpu.pipeline_mode<synchronous>, transform_indices = @transform_5, window_bounds = array<i64: 32, 192>}, {pipeline_mode = #tpu.pipeline_mode<synchronous>, transform_indices = @transform_6, window_bounds = array<i64: 64, 32>}, {transform_indices = @transform_7, window_bounds = array<i64: 1, 8, 32>}]} {
    %c0 = arith.constant 0 : index
    %c0_0 = arith.constant 0 : index
    %c0_1 = arith.constant 0 : index
    %0 = vector.load %arg1[%c0, %c0_0, %c0_1] : memref<1x8x32xf32, #tpu.memory_space<vmem>>, vector<1x8x32xf32>
    %1 = vector.shape_cast %0 : vector<1x8x32xf32> to vector<8x32xf32>
    %cst = arith.constant dense<0.000000e+00> : vector<8xf32>
    %2 = vector.multi_reduction <add>, %1, %cst [1] : vector<8x32xf32> to vector<8xf32>
    %3 = vector.shape_cast %2 : vector<8xf32> to vector<8x1xf32>
    %cst_2 = arith.constant 3.200000e+01 : f32
    %4 = vector.broadcast %cst_2 : f32 to vector<8x1xf32>
    %5 = arith.divf %3, %4 : vector<8x1xf32>
    %6 = vector.broadcast %5 : vector<8x1xf32> to vector<8x32xf32>
    %7 = arith.subf %1, %6 : vector<8x32xf32>
    %8 = arith.mulf %7, %7 : vector<8x32xf32>
    %cst_3 = arith.constant dense<0.000000e+00> : vector<8xf32>
    %9 = vector.multi_reduction <add>, %8, %cst_3 [1] : vector<8x32xf32> to vector<8xf32>
    %10 = vector.shape_cast %9 : vector<8xf32> to vector<8x1xf32>
    %cst_4 = arith.constant 3.200000e+01 : f32
    %11 = vector.broadcast %cst_4 : f32 to vector<8x1xf32>
    %12 = arith.divf %10, %11 : vector<8x1xf32>
    %13 = vector.broadcast %5 : vector<8x1xf32> to vector<8x32xf32>
    %14 = arith.subf %1, %13 : vector<8x32xf32>
    %cst_5 = arith.constant 9.99999974E-6 : f32
    %15 = vector.broadcast %cst_5 : f32 to vector<8x1xf32>
    %16 = arith.addf %12, %15 : vector<8x1xf32>
    %17 = math.rsqrt %16 : vector<8x1xf32>
    %18 = vector.broadcast %17 : vector<8x1xf32> to vector<8x32xf32>
    %19 = arith.mulf %14, %18 : vector<8x32xf32>
    %c0_6 = arith.constant 0 : index
    %c0_7 = arith.constant 0 : index
    %20 = vector.load %arg2[%c0_6, %c0_7] : memref<1x32xf32, #tpu.memory_space<vmem>>, vector<1x32xf32>
    %21 = vector.broadcast %20 : vector<1x32xf32> to vector<8x32xf32>
    %22 = arith.mulf %19, %21 : vector<8x32xf32>
    %c0_8 = arith.constant 0 : index
    %c0_9 = arith.constant 0 : index
    %23 = vector.load %arg3[%c0_8, %c0_9] : memref<1x32xf32, #tpu.memory_space<vmem>>, vector<1x32xf32>
    %24 = vector.broadcast %23 : vector<1x32xf32> to vector<8x32xf32>
    %25 = arith.addf %22, %24 : vector<8x32xf32>
    %c0_10 = arith.constant 0 : index
    %c0_11 = arith.constant 0 : index
    %26 = vector.load %arg6[%c0_10, %c0_11] : memref<32x192xf32, #tpu.memory_space<vmem>>, vector<32x192xf32>
    %cst_12 = arith.constant dense<0.000000e+00> : vector<8x192xf32>
    %27 = tpu.matmul %25, %26, %cst_12 {dimension_numbers = #tpu.dot_dimension_numbers<[1], [0], [0], [1], [0, 0, 1, 1], [], []>} : vector<8x32xf32>, vector<32x192xf32>, vector<8x192xf32> -> vector<8x192xf32>
    %28 = vector.extract_strided_slice %27 {offsets = [0, 0], sizes = [8, 16], strides = [1, 1]} : vector<8x192xf32> to vector<8x16xf32>
    %29 = vector.extract_strided_slice %27 {offsets = [0, 16], sizes = [8, 16], strides = [1, 1]} : vector<8x192xf32> to vector<8x16xf32>
    %30 = vector.extract_strided_slice %27 {offsets = [0, 32], sizes = [8, 16], strides = [1, 1]} : vector<8x192xf32> to vector<8x16xf32>
    %31 = vector.extract_strided_slice %27 {offsets = [0, 48], sizes = [8, 16], strides = [1, 1]} : vector<8x192xf32> to vector<8x16xf32>
    %32 = vector.shape_cast %28 : vector<8x16xf32> to vector<1x8x16xf32>
    %33 = vector.shape_cast %29 : vector<8x16xf32> to vector<1x8x16xf32>
    %34 = vector.shape_cast %30 : vector<8x16xf32> to vector<1x8x16xf32>
    %35 = vector.shape_cast %31 : vector<8x16xf32> to vector<1x8x16xf32>
    %36 = tpu.concatenate %32, %33, %34, %35 in 0 : vector<1x8x16xf32>, vector<1x8x16xf32>, vector<1x8x16xf32>, vector<1x8x16xf32> -> vector<4x8x16xf32>
    %37 = vector.extract_strided_slice %27 {offsets = [0, 64], sizes = [8, 16], strides = [1, 1]} : vector<8x192xf32> to vector<8x16xf32>
    %38 = vector.extract_strided_slice %27 {offsets = [0, 80], sizes = [8, 16], strides = [1, 1]} : vector<8x192xf32> to vector<8x16xf32>
    %39 = vector.extract_strided_slice %27 {offsets = [0, 96], sizes = [8, 16], strides = [1, 1]} : vector<8x192xf32> to vector<8x16xf32>
    %40 = vector.extract_strided_slice %27 {offsets = [0, 112], sizes = [8, 16], strides = [1, 1]} : vector<8x192xf32> to vector<8x16xf32>
    %41 = vector.shape_cast %37 : vector<8x16xf32> to vector<1x8x16xf32>
    %42 = vector.shape_cast %38 : vector<8x16xf32> to vector<1x8x16xf32>
    %43 = vector.shape_cast %39 : vector<8x16xf32> to vector<1x8x16xf32>
    %44 = vector.shape_cast %40 : vector<8x16xf32> to vector<1x8x16xf32>
    %45 = tpu.concatenate %41, %42, %43, %44 in 0 : vector<1x8x16xf32>, vector<1x8x16xf32>, vector<1x8x16xf32>, vector<1x8x16xf32> -> vector<4x8x16xf32>
    %46 = vector.extract_strided_slice %27 {offsets = [0, 128], sizes = [8, 16], strides = [1, 1]} : vector<8x192xf32> to vector<8x16xf32>
    %47 = vector.extract_strided_slice %27 {offsets = [0, 144], sizes = [8, 16], strides = [1, 1]} : vector<8x192xf32> to vector<8x16xf32>
    %48 = vector.extract_strided_slice %27 {offsets = [0, 160], sizes = [8, 16], strides = [1, 1]} : vector<8x192xf32> to vector<8x16xf32>
    %49 = vector.extract_strided_slice %27 {offsets = [0, 176], sizes = [8, 16], strides = [1, 1]} : vector<8x192xf32> to vector<8x16xf32>
    %50 = vector.shape_cast %46 : vector<8x16xf32> to vector<1x8x16xf32>
    %51 = vector.shape_cast %47 : vector<8x16xf32> to vector<1x8x16xf32>
    %52 = vector.shape_cast %48 : vector<8x16xf32> to vector<1x8x16xf32>
    %53 = vector.shape_cast %49 : vector<8x16xf32> to vector<1x8x16xf32>
    %54 = tpu.concatenate %50, %51, %52, %53 in 0 : vector<1x8x16xf32>, vector<1x8x16xf32>, vector<1x8x16xf32>, vector<1x8x16xf32> -> vector<4x8x16xf32>
    %55 = arith.mulf %36, %36 : vector<4x8x16xf32>
    %cst_13 = arith.constant dense<0.000000e+00> : vector<4x8xf32>
    %56 = vector.multi_reduction <add>, %55, %cst_13 [2] : vector<4x8x16xf32> to vector<4x8xf32>
    %57 = vector.shape_cast %56 : vector<4x8xf32> to vector<4x8x1xf32>
    %58 = math.sqrt %57 : vector<4x8x1xf32>
    %cst_14 = arith.constant 9.99999996E-13 : f32
    %59 = vector.broadcast %cst_14 : f32 to vector<4x8x1xf32>
    %60 = arith.maximumf %58, %59 : vector<4x8x1xf32>
    %61 = vector.broadcast %60 : vector<4x8x1xf32> to vector<4x8x16xf32>
    %62 = arith.divf %36, %61 : vector<4x8x16xf32>
    %c0_15 = arith.constant 0 : index
    %c0_16 = arith.constant 0 : index
    %63 = vector.load %arg4[%c0_15, %c0_16] : memref<4x16xf32, #tpu.memory_space<vmem>>, vector<4x16xf32>
    %64 = vector.shape_cast %63 : vector<4x16xf32> to vector<4x1x16xf32>
    %65 = vector.broadcast %64 : vector<4x1x16xf32> to vector<4x8x16xf32>
    %66 = arith.mulf %62, %65 : vector<4x8x16xf32>
    %67 = arith.mulf %45, %45 : vector<4x8x16xf32>
    %cst_17 = arith.constant dense<0.000000e+00> : vector<4x8xf32>
    %68 = vector.multi_reduction <add>, %67, %cst_17 [2] : vector<4x8x16xf32> to vector<4x8xf32>
    %69 = vector.shape_cast %68 : vector<4x8xf32> to vector<4x8x1xf32>
    %70 = math.sqrt %69 : vector<4x8x1xf32>
    %cst_18 = arith.constant 9.99999996E-13 : f32
    %71 = vector.broadcast %cst_18 : f32 to vector<4x8x1xf32>
    %72 = arith.maximumf %70, %71 : vector<4x8x1xf32>
    %73 = vector.broadcast %72 : vector<4x8x1xf32> to vector<4x8x16xf32>
    %74 = arith.divf %45, %73 : vector<4x8x16xf32>
    %c0_19 = arith.constant 0 : index
    %c0_20 = arith.constant 0 : index
    %75 = vector.load %arg5[%c0_19, %c0_20] : memref<4x16xf32, #tpu.memory_space<vmem>>, vector<4x16xf32>
    %76 = vector.shape_cast %75 : vector<4x16xf32> to vector<4x1x16xf32>
    %77 = vector.broadcast %76 : vector<4x1x16xf32> to vector<4x8x16xf32>
    %78 = arith.mulf %74, %77 : vector<4x8x16xf32>
    "tpu.trace_start"() <{level = 10 : i32, message = "hid,hjd->hij"}> : () -> ()
    %cst_21 = arith.constant dense<0.000000e+00> : vector<4x8x8xf32>
    %79 = tpu.matmul %66, %78, %cst_21 {dimension_numbers = #tpu.dot_dimension_numbers<[2], [2], [1], [1], [0, 0, 0, 1, 1, 1], [0], [0]>} : vector<4x8x16xf32>, vector<4x8x16xf32>, vector<4x8x8xf32> -> vector<4x8x8xf32>
    "tpu.trace_stop"() : () -> ()
    %cst_22 = arith.constant dense<0xFF800000> : vector<4x8xf32>
    %80 = vector.multi_reduction <maximumf>, %79, %cst_22 [2] : vector<4x8x8xf32> to vector<4x8xf32>
    %81 = vector.shape_cast %80 : vector<4x8xf32> to vector<4x8x1xf32>
    %82 = vector.broadcast %81 : vector<4x8x1xf32> to vector<4x8x8xf32>
    %83 = arith.subf %79, %82 : vector<4x8x8xf32>
    %84 = math.exp %83 : vector<4x8x8xf32>
    %cst_23 = arith.constant dense<0.000000e+00> : vector<4x8xf32>
    %85 = vector.multi_reduction <add>, %84, %cst_23 [2] : vector<4x8x8xf32> to vector<4x8xf32>
    %86 = vector.shape_cast %85 : vector<4x8xf32> to vector<4x8x1xf32>
    %87 = tpu.reciprocal %86 {approx = true} : vector<4x8x1xf32> -> vector<4x8x1xf32>
    %88 = vector.broadcast %87 : vector<4x8x1xf32> to vector<4x8x8xf32>
    %89 = arith.mulf %84, %88 : vector<4x8x8xf32>
    "tpu.trace_start"() <{level = 10 : i32, message = "hij,hjd->hid"}> : () -> ()
    %cst_24 = arith.constant dense<0.000000e+00> : vector<4x8x16xf32>
    %90 = tpu.matmul %89, %54, %cst_24 {dimension_numbers = #tpu.dot_dimension_numbers<[2], [1], [1], [2], [0, 0, 0, 1, 1, 2], [0], [0]>} : vector<4x8x8xf32>, vector<4x8x16xf32>, vector<4x8x16xf32> -> vector<4x8x16xf32>
    "tpu.trace_stop"() : () -> ()
    %91 = vector.extract_strided_slice %90 {offsets = [0, 0, 0], sizes = [1, 8, 16], strides = [1, 1, 1]} : vector<4x8x16xf32> to vector<1x8x16xf32>
    %92 = vector.shape_cast %91 : vector<1x8x16xf32> to vector<8x16xf32>
    %93 = vector.extract_strided_slice %90 {offsets = [1, 0, 0], sizes = [1, 8, 16], strides = [1, 1, 1]} : vector<4x8x16xf32> to vector<1x8x16xf32>
    %94 = vector.shape_cast %93 : vector<1x8x16xf32> to vector<8x16xf32>
    %95 = vector.extract_strided_slice %90 {offsets = [2, 0, 0], sizes = [1, 8, 16], strides = [1, 1, 1]} : vector<4x8x16xf32> to vector<1x8x16xf32>
    %96 = vector.shape_cast %95 : vector<1x8x16xf32> to vector<8x16xf32>
    %97 = vector.extract_strided_slice %90 {offsets = [3, 0, 0], sizes = [1, 8, 16], strides = [1, 1, 1]} : vector<4x8x16xf32> to vector<1x8x16xf32>
    %98 = vector.shape_cast %97 : vector<1x8x16xf32> to vector<8x16xf32>
    %99 = tpu.concatenate %92, %94, %96, %98 in 1 : vector<8x16xf32>, vector<8x16xf32>, vector<8x16xf32>, vector<8x16xf32> -> vector<8x64xf32>
    %c0_25 = arith.constant 0 : index
    %c0_26 = arith.constant 0 : index
    %100 = vector.load %arg7[%c0_25, %c0_26] : memref<64x32xf32, #tpu.memory_space<vmem>>, vector<64x32xf32>
    %cst_27 = arith.constant dense<0.000000e+00> : vector<8x32xf32>
    %101 = tpu.matmul %99, %100, %cst_27 {dimension_numbers = #tpu.dot_dimension_numbers<[1], [0], [0], [1], [0, 0, 1, 1], [], []>} : vector<8x64xf32>, vector<64x32xf32>, vector<8x32xf32> -> vector<8x32xf32>
    %102 = vector.shape_cast %101 : vector<8x32xf32> to vector<1x8x32xf32>
    %c0_28 = arith.constant 0 : index
    %c0_29 = arith.constant 0 : index
    %c0_30 = arith.constant 0 : index
    %103 = vector.load %arg8[%c0_28, %c0_29, %c0_30] : memref<1x8x32xf32, #tpu.memory_space<vmem>>, vector<1x8x32xf32>
    tpu.vector_store %arg8[%c0_28, %c0_29, %c0_30], %102 {strides = array<i32>} : memref<1x8x32xf32, #tpu.memory_space<vmem>>, vector<1x8x32xf32>,
    return
  }
  func.func @transform_0(%arg0: i32) -> (i32, i32, i32) {
    %c0_i32 = arith.constant 0 : i32
    %c0_i32_0 = arith.constant 0 : i32
    %c0_i32_1 = arith.constant 0 : i32
    return %arg0, %c0_i32, %c0_i32_0 : i32, i32, i32
  }
  func.func @transform_1(%arg0: i32) -> (i32, i32) {
    %c0_i32 = arith.constant 0 : i32
    %c0_i32_0 = arith.constant 0 : i32
    %c0_i32_1 = arith.constant 0 : i32
    return %c0_i32, %c0_i32_0 : i32, i32
  }
  func.func @transform_2(%arg0: i32) -> (i32, i32) {
    %c0_i32 = arith.constant 0 : i32
    %c0_i32_0 = arith.constant 0 : i32
    %c0_i32_1 = arith.constant 0 : i32
    return %c0_i32, %c0_i32_0 : i32, i32
  }
  func.func @transform_3(%arg0: i32) -> (i32, i32) {
    %c0_i32 = arith.constant 0 : i32
    %c0_i32_0 = arith.constant 0 : i32
    %c0_i32_1 = arith.constant 0 : i32
    return %c0_i32, %c0_i32_0 : i32, i32
  }
  func.func @transform_4(%arg0: i32) -> (i32, i32) {
    %c0_i32 = arith.constant 0 : i32
    %c0_i32_0 = arith.constant 0 : i32
    %c0_i32_1 = arith.constant 0 : i32
    return %c0_i32, %c0_i32_0 : i32, i32
  }
  func.func @transform_5(%arg0: i32) -> (i32, i32) {
    %c0_i32 = arith.constant 0 : i32
    %c0_i32_0 = arith.constant 0 : i32
    %c0_i32_1 = arith.constant 0 : i32
    return %c0_i32, %c0_i32_0 : i32, i32
  }
  func.func @transform_6(%arg0: i32) -> (i32, i32) {
    %c0_i32 = arith.constant 0 : i32
    %c0_i32_0 = arith.constant 0 : i32
    %c0_i32_1 = arith.constant 0 : i32
    return %c0_i32, %c0_i32_0 : i32, i32
  }
  func.func @transform_7(%arg0: i32) -> (i32, i32, i32) {
    %c0_i32 = arith.constant 0 : i32
    %c0_i32_0 = arith.constant 0 : i32
    %c0_i32_1 = arith.constant 0 : i32
    return %arg0, %c0_i32, %c0_i32_0 : i32, i32, i32
  }
}

</mosaic_0001>

<bundles_post_ra>
// kernel: attention_forward.1
= control target key start
LH: loop header
LB: loop body
LE: loop exit
PB: predicated region body
PF: predicated region fallthrough
CT: control target
= control target key end

     0   :  { %12 = vsyncpa [#allocation3], 0  ;;  %s2075_s0 = inlined_call_operand.vmem [shape: f32[2,8,32], index: 0, kind: input, shape index: {}]   ;;  %s2076_s1 = inlined_call_operand.vmem [shape: f32[1,32], index: 1, kind: input, shape index: {}]   ;;  %s2077_s2 = inlined_call_operand.vmem [shape: f32[1,32], index: 2, kind: input, shape index: {}]   ;;  %s2078_s3 = inlined_call_operand.vmem [shape: f32[4,16], index: 3, kind: input, shape index: {}]   ;;  %s2079_s4 = inlined_call_operand.vmem [shape: f32[4,16], index: 4, kind: input, shape index: {}]   ;;  %s2080_s5 = inlined_call_operand.vmem [shape: f32[32,192], index: 5, kind: input, shape index: {}]   ;;  %s2081_s6 = inlined_call_operand.vmem [shape: f32[64,32], index: 6, kind: input, shape index: {}]   ;;  %s2082_s7 = inlined_call_operand.hbm [shape: f32[2,8,32], index: 7, kind: output, shape index: {}]  }
   0x1   :  { %14 = vsyncpa [#allocation3 + $0x1], 0  ;;  %s1786_s24 = smov 0   ;;  %s1788_s25 = smov 0  }
   0x2   :  { %s1790_s26 = smov 0   ;;  %s1792_s27 = smov 0  }
   0x3 LB: > { %s1807_s28 = sadd.s32 4294967295, %s1733_s27   ;;  %s1462_s29 = sadd.s32 4294967294, %s1733_s27   ;;  %s1733_s27 = sphi %s1792_s27, %s2088_s27   ;;  %s1729_s26 = sphi %s1790_s26, %s2087_s26   ;;  %s1725_s25 = sphi %s1788_s25, %s2086_s25   ;;  %s1721_s24 = sphi %s1786_s24, %s2085_s24  }
   0x4   : > { %s1811_s30 = sadd.s32 1, %s1733_s27   ;;  %s179_s8 = sadd.s32 1, %s1729_s26 }
   0x5   : > { %s176_s9 = ssub.s32 %s1733_s27, %s1811_s30  ;;  %p189_p0 = scmp.ne.s32.totalorder %s1729_s26, %s1725_s25 }
   0x6   : > { %p177_p1 = scmp.eq.s32.totalorder %s176_s9, 0  ;;  %p190_p2 = scmp.eq.s32.totalorder %s1807_s28, 1 }
   0x7   : > { %p195_p3 = scmp.ne.s32.totalorder %s1725_s25, %s1721_s24  ;;  %p196_p4 = scmp.eq.s32.totalorder %s1462_s29, 1 }
   0x8   : > { %s1822_s10 = scalar_select %p177_p1, %s1729_s26, %s179_s8  }
   0x9   : > { %p1824_p5 = por %p190_p2, %p189_p0  ;;  %p1828_p6 = por %p196_p4, %p195_p3 }
   0xa   : > { %p1465_p7 = scmp.ge.s32.totalorder %s1733_s27, 1  ;;  %p239_p8 = scmp.lt.s32.totalorder %s1733_s27, 3 }
   0xc   : > { %p240_p9 = pnand %p1465_p7, %p239_p8 }
   0xd   : > { %p270_p10 = scmp.lt.s32.totalorder (!%p240_p9), %s1807_s28, 1  ;;  %s1736_s29 = smov (!%p240_p9), 80  }
   0xe   : > { %243 = sbr.rel (%p240_p9) target bundleno = 2081 (0x821), region = 48  ;;  %s1737_s8 = smov (!%p240_p9), 112  }
   0xf   : > { %s1738_s9 = smov (!%p240_p9), 96   ;;  %s1742_s20 = smov (!%p240_p9), 16  }
  0x10   : > { %s1743_s21 = smov (!%p240_p9), 32   ;;  %s1744_s22 = smov (!%p240_p9), 48  }
  0x11   : > { %s267_s23 = sand.u32 (!%p240_p9), 1, %s1725_s25  }
  0x13   : > { %s271_s13 = scalar_select %p270_p10, %s1807_s28, 1  ;;  %vm275_vm0 = vcmask 261120   ;;  %v313_v7 = vld [vmem:[%s2080_s5 + $0x38] sm:$0xff]  ;;  %v312_v8 = vld [vmem:[%s2080_s5 + $0x30] sm:$0xff]  ;;  %v311_v9 = vld [vmem:[%s2080_s5 + $0x28] sm:$0xff]  ;;  %v1735_v11 = vmov 0.0   ;;  %v478_v39 = vlaneseq }
  0x14   : > { %341 = vmatprep.subr.mxu1 %v313_v7  ;;  %v310_v10 = vld [vmem:[%s2080_s5 + $0x20] sm:$0xff]  ;;  %381 = vmatprep.mubr.f32.mxu1 %v1735_v11  ;;  %v309_v12 = vld [vmem:[%s2080_s5 + $0x18] sm:$0xff]  ;;  %v308_v13 = vld [vmem:[%s2080_s5 + $0x10] sm:$0xff]  ;;  %vm412_vm1 = vcmask 130048   ;;  %v1740_v37 = vmov 1966171168  }
  0x15   : > { %s1467_s14 = sshll.u32 %s271_s13, 3  ;;  %342 = vmatpush1.msra.mxu1 %v312_v8  ;;  %1525 = vmatprep.subr.mxu0 %v1735_v11  ;;  %v307_v14 = vld [vmem:[%s2080_s5 + $0x8] sm:$0xff]  ;;  %v306_v15 = vld [vmem:[%s2080_s5] sm:$0xff]  ;;  %s1739_s13 = smov 64   ;;  %v476_v38 = vunpack.c.l.s4 %v1740_v37  ;;  %v479_v43 = vshrl.u32 %v478_v39, 7  ;;  %vm1741_vm4 = vmmov 0  }
  0x16   : > { %s273_s17 = scalar_lea.vmem %s2075_s0, %s1467_s14  ;;  %343 = vmatprep.subr.mxu1 %v311_v9  ;;  %v1468_v20 = vld [vmem:[%s2076_s1] ss:$0 sm:$0xff]  ;;  %1527 = vmatprep.mubr.msk.f32.mxu0 %vm1741_vm4, %v1735_v11 }
  0x17   : > { %v274_v0 = vld [vmem:[%s273_s17] sm:$0xff]  ;;  %344 = vmatpush1.msra.mxu1 %v310_v10  ;;  %v477_v42 = vunpack.c.0.s8 %v476_v38  ;;  %v1910_v48 = vsub.s32 0, %v479_v43  ;;  %s1390_s17 = scalar_lea.sflag [#allocation3], %s267_s23 }
  0x18   : > { %v276_v1 = vsel %vm275_vm0, %v274_v0, 0.0  ;;  %345 = vmatprep.subr.mxu1 %v309_v12  ;;  %v1469_v22 = vld [vmem:[%s2077_s2] ss:$0 sm:$0xff] }
  0x19   : > { %277 = vadd.xlane.f32.xlu0 %v276_v1  ;;  %346 = vmatpush1.msra.mxu1 %v308_v13  ;;  %v1905_v46 = vsub.s32 %v477_v42, %v479_v43  ;;  %v1472_v47 = vld.sshfl [vmem:[%s2079_s4] sm:$0x33 pattern:$0x75316420] }
  0x1a   : > { %347 = vmatprep.subr.mxu1 %v307_v14  ;;  %v592_v49 = vcombine.high %v1472_v47, %v1472_v47 }
  0x1b   : > { %348 = vmatpush1.msra.mxu1 %v306_v15  ;;  %v599_v50 = vrot.slane %v1472_v47, %v1905_v46 }
  0x1c   : > { %1515 = vmatprep.subr.mxu1 %v1735_v11  ;;  %v606_v53 = vrot.slane %v592_v49, %v1905_v46 }
  0x1d   : > { %v612_v51 = vrot.slane %v599_v50, %v1910_v48  ;;  %v607_v52 = vcombine.high %v599_v50, %v599_v50 }
  0x1e   : > { %v608_v55 = vcombine.high %v606_v53, %v606_v53  ;;  %v616_v57 = vrot.slane %v606_v53, %v1910_v48 }
  0x1f   : > { %v620_v54 = vrot.slane %v607_v52, %v1910_v48 }
  0x20   : > { %v624_v56 = vrot.slane %v608_v55, %v1910_v48 }
  0xa2   : > { %v278_v2 = vpop.xlane.xlu0 %277 }
  0xa3   : > { %v280_v3 = vmul.f32 0.03125, %v278_v2 }
  0xa5   : > { %v281_v4 = vsub.f32 %v274_v0, %v280_v3 }
  0xa7   : > { %v282_v5 = vmul.f32 %v281_v4, %v281_v4 }
  0xa9   : > { %v283_v6 = vsel %vm275_vm0, %v282_v5, 0.0 }
  0xaa   : > { %284 = vadd.xlane.f32.xlu0 %v283_v6 }
 0x133   : > { %v285_v16 = vpop.xlane.xlu0 %284 }
 0x134   : > { %v286_v17 = vmul.f32 0.03125, %v285_v16 }
 0x136   : > { %v287_v18 = vadd.f32 1e-05, %v286_v17 }
 0x138   : > { %1623 = vrsqrt.f32 %v287_v18 }
 0x145   : > { %v1624_v19 = vpop.eup %1623 }
 0x146   : > { %v289_v21 = vmul.f32 %v1624_v19, %v281_v4 }
 0x148   : > { %v297_v23 = vmul.f32 %v1468_v20, %v289_v21 }
 0x14a   : > { %v305_v24 = vadd.f32 %v1469_v22, %v297_v23 }
 0x14c   : > { %1470 = vmatmul.mubr.msk.f32.vlgmr.msra.gmra.mxu1 %vm275_vm0, %v305_v24 }
 0x14d   : > { %1517 = vmatprep.mubr.msk.f32.mxu1 %vm1741_vm4, %v1735_v11 }
 0x20c   : > { %v1875_v25 = vpop.f32.mrf.mxu1 }
 0x20d   : > { %395 = vrot.lane.b32.xlu0 %v1875_v25, %s1736_s29  ;;  %389 = vrot.lane.b32.xlu1 %v1875_v25, %s1737_s8  ;;  %v408_v26 = vmul.f32 %v1875_v25, %v1875_v25 }
 0x20f   : > { %v413_v58 = vsel %vm412_vm1, %v408_v26, 0.0 }
 0x211   : > { %392 = vrot.lane.b32.xlu1 %v1875_v25, %s1738_s9 }
 0x215   : > { %519 = vrot.lane.b32.xlu1 %v408_v26, %s1739_s13 }
 0x27f   : > { %v1886_v27 = vpop.permute.xlu1 %389  ;;  %v1895_v31 = vpop.permute.xlu0 %395 }
 0x280   : > { %v409_v28 = vmul.f32 %v1886_v27, %v1886_v27  ;;  %v411_v32 = vmul.f32 %v1895_v31, %v1895_v31 }
 0x282   : > { %521 = vrot.lane.b32.xlu1 %v409_v28, %s1739_s13  ;;  %v416_v59 = vsel %vm412_vm1, %v409_v28, 0.0  ;;  %v422_v61 = vsel %vm412_vm1, %v411_v32, 0.0 }
 0x283   : > { %v1891_v29 = vpop.permute.xlu1 %392 }
 0x284   : > { %v410_v30 = vmul.f32 %v1891_v29, %v1891_v29 }
 0x286   : > { %523 = vrot.lane.b32.xlu1 %v410_v30, %s1739_s13  ;;  %v419_v60 = vsel %vm412_vm1, %v410_v30, 0.0 }
 0x287   : > { %v520_v33 = vpop.permute.xlu1 %519 }
 0x288   : > { %v531_v34 = vsel %vm412_vm1, %v520_v33, 0.0 }
 0x28a   : > { %525 = vrot.lane.b32.xlu1 %v411_v32, %s1739_s13 }
 0x2ae   : > { %532 = vadd.xlane.f32.xlu1 %v531_v34 }
 0x2f4   : > { %v522_v35 = vpop.permute.xlu1 %521 }
 0x2f5   : > { %v534_v36 = vsel %vm412_vm1, %v522_v35, 0.0 }
 0x2f6   : > { %535 = vadd.xlane.f32.xlu0 %v534_v36 }
 0x2f8   : > { %v524_v40 = vpop.permute.xlu1 %523 }
 0x2f9   : > { %v537_v41 = vsel %vm412_vm1, %v524_v40, 0.0 }
 0x2fa   : > { %538 = vadd.xlane.f32.xlu1 %v537_v41 }
 0x2fc   : > { %v526_v44 = vpop.permute.xlu1 %525 }
 0x2fd   : > { %v540_v45 = vsel %vm412_vm1, %v526_v44, 0.0 }
 0x2fe   : > { %541 = vadd.xlane.f32.xlu0 %v540_v45 }
 0x30b   : > { %625 = vrot.lane.b32.xlu1 %v612_v51, %s1739_s13 }
 0x30f   : > { %629 = vrot.lane.b32.xlu1 %v620_v54, %s1739_s13 }
 0x313   : > { %631 = vrot.lane.b32.xlu1 %v624_v56, %s1739_s13 }
 0x314   : > { %627 = vrot.lane.b32.xlu0 %v616_v57, %s1739_s13 }
 0x333   : > { %414 = vadd.xlane.f32.xlu0 %v413_v58 }
 0x337   : > { %417 = vadd.xlane.f32.xlu1 %v416_v59  ;;  %420 = vadd.xlane.f32.xlu0 %v419_v60  ;;  %v533_v62 = vpop.xlane.xlu1 %532  ;;  %v1471_v59 = vld.sshfl [vmem:[%s2078_s3] sm:$0x33 pattern:$0x75316420] }
 0x338   : > { %1625 = vrsqrt.f32 %v533_v62  ;;  %vm545_vm2 = vcmp.eq.f32.partialorder %v533_v62, inf  ;;  %v548_v2 = vand.u32 2147483648, %v533_v62  ;;  %vm547_vm3 = vcmp.eq.f32.partialorder %v533_v62, 0.0 }
 0x33b   : > { %423 = vadd.xlane.f32.xlu0 %v422_v61  ;;  %v481_v61 = vrot.slane %v1471_v59, %v1905_v46 }
 0x345   : > { %v1626_v63 = vpop.eup %1625 }
 0x346   : > { %v544_v0 = vmul.f32 %v1626_v63, %v533_v62 }
 0x348   : > { %v546_v1 = vsel %vm545_vm2, %v533_v62, %v544_v0 }
 0x349   : > { %v549_v3 = vsel %vm547_vm3, %v548_v2, %v546_v1  ;;  %v494_v2 = vrot.slane %v481_v61, %v1910_v48 }
 0x34a   : > { %v571_v4 = vmax.f32 %v549_v3, 1e-12 }
 0x34c   : > { %1627 = vrcp.f32 %v571_v4 }
 0x359   : > { %v1628_v7 = vpop.eup %1627 }
 0x35a   : > { %v576_v9 = vmul.f32 %v1628_v7, %v1875_v25 }
 0x37f   : > { %v536_v5 = vpop.xlane.xlu0 %535 }
 0x380   : > { %1629 = vrsqrt.f32 %v536_v5  ;;  %vm552_vm5 = vcmp.eq.f32.partialorder %v536_v5, inf  ;;  %v555_v15 = vand.u32 2147483648, %v536_v5  ;;  %vm554_vm6 = vcmp.eq.f32.partialorder %v536_v5, 0.0 }
 0x383   : > { %v539_v6 = vpop.xlane.xlu1 %538 }
 0x384   : > { %1631 = vrsqrt.f32 %v539_v6  ;;  %vm559_vm7 = vcmp.eq.f32.partialorder %v539_v6, inf  ;;  %v562_v21 = vand.u32 2147483648, %v539_v6  ;;  %vm561_vm8 = vcmp.eq.f32.partialorder %v539_v6, 0.0 }
 0x387   : > { %v542_v8 = vpop.xlane.xlu0 %541  ;;  %v626_v10 = vpop.permute.xlu1 %625 }
 0x388   : > { %1633 = vrsqrt.f32 %v542_v8  ;;  %v637_v12 = vmul.f32 %v626_v10, %v576_v9  ;;  %vm566_vm9 = vcmp.eq.f32.partialorder %v542_v8, inf  ;;  %v569_v30 = vand.u32 2147483648, %v542_v8 }
 0x389   : > { %vm568_vm10 = vcmp.eq.f32.partialorder %v542_v8, 0.0 }
 0x38a   : > { %642 = vrot.lane.b32.xlu1 %v637_v12, %s1739_s13 }
 0x38b   : > { %v628_v36 = vpop.permute.xlu0 %627  ;;  %v630_v38 = vpop.permute.xlu1 %629 }
 0x38d   : > { %v1630_v13 = vpop.eup %1629 }
 0x38e   : > { %v551_v14 = vmul.f32 %v1630_v13, %v536_v5 }
 0x38f   : > { %v632_v44 = vpop.permute.xlu1 %631 }
 0x390   : > { %v553_v16 = vsel %vm552_vm5, %v536_v5, %v551_v14 }
 0x391   : > { %v1632_v17 = vpop.eup %1631  ;;  %v556_v18 = vsel %vm554_vm6, %v555_v15, %v553_v16  ;;  %vm953_vm6 = vcmask 64512  }
 0x392   : > { %v572_v19 = vmax.f32 %v556_v18, 1e-12  ;;  %v558_v20 = vmul.f32 %v1632_v17, %v539_v6 }
 0x394   : > { %1635 = vrcp.f32 %v572_v19  ;;  %v560_v22 = vsel %vm559_vm7, %v539_v6, %v558_v20  ;;  %v474_v20 = vcombine.high %v1471_v59, %v1471_v59  ;;  %vm1314_vm7 = vcmask 523264  }
 0x395   : > { %v1634_v23 = vpop.eup %1633  ;;  %v563_v24 = vsel %vm561_vm8, %v562_v21, %v560_v22 }
 0x396   : > { %v573_v26 = vmax.f32 %v563_v24, 1e-12  ;;  %v565_v28 = vmul.f32 %v1634_v23, %v542_v8  ;;  %v488_v21 = vrot.slane %v474_v20, %v1905_v46 }
 0x398   : > { %1637 = vrcp.f32 %v573_v26  ;;  %v567_v32 = vsel %vm566_vm9, %v542_v8, %v565_v28  ;;  %v498_v24 = vrot.slane %v488_v21, %v1910_v48  ;;  %v489_v26 = vcombine.high %v481_v61, %v481_v61 }
 0x399   : > { %v570_v33 = vsel %vm568_vm10, %v569_v30, %v567_v32 }
 0x39a   : > { %v574_v34 = vmax.f32 %v570_v33, 1e-12 }
 0x39c   : > { %1639 = vrcp.f32 %v574_v34  ;;  %v502_v34 = vrot.slane %v489_v26, %v1910_v48  ;;  %v1312_v26 = vld [vmem:[%s2081_s6 + $0x30] sm:$0xff] }
 0x3a1   : > { %v1636_v35 = vpop.eup %1635 }
 0x3a2   : > { %v578_v37 = vmul.f32 %v1636_v35, %v1886_v27  ;;  %v490_v35 = vcombine.high %v488_v21, %v488_v21 }
 0x3a4   : > { %v638_v39 = vmul.f32 %v628_v36, %v578_v37 }
 0x3a5   : > { %v1638_v40 = vpop.eup %1637 }
 0x3a6   : > { %720 = vrot.lane.b32.xlu0 %v638_v39, %s1739_s13  ;;  %v580_v41 = vmul.f32 %v1638_v40, %v1891_v29 }
 0x3a8   : > { %v639_v42 = vmul.f32 %v630_v38, %v580_v41  ;;  %v385_v38 = vpop.f32.mrf.mxu1 }
 0x3a9   : > { %v1640_v43 = vpop.eup %1639 }
 0x3aa   : > { %798 = vrot.lane.b32.xlu1 %v639_v42, %s1739_s13  ;;  %v582_v45 = vmul.f32 %v1640_v43, %v1895_v31 }
 0x3ac   : > { %v640_v47 = vmul.f32 %v632_v44, %v582_v45 }
 0x3ae   : > { %876 = vrot.lane.b32.xlu1 %v640_v47, %s1739_s13 }
 0x3bc   : > { %v415_v49 = vpop.xlane.xlu0 %414 }
 0x3bd   : > { %1641 = vrsqrt.f32 %v415_v49  ;;  %vm427_vm11 = vcmp.eq.f32.partialorder %v415_v49, inf  ;;  %v430_v53 = vand.u32 2147483648, %v415_v49  ;;  %vm429_vm12 = vcmp.eq.f32.partialorder %v415_v49, 0.0 }
 0x3c0   : > { %v418_v55 = vpop.xlane.xlu1 %417  ;;  %v421_v57 = vpop.xlane.xlu0 %420 }
 0x3c1   : > { %1643 = vrsqrt.f32 %v418_v55  ;;  %vm434_vm13 = vcmp.eq.f32.partialorder %v418_v55, inf  ;;  %v437_v6 = vand.u32 2147483648, %v418_v55  ;;  %vm436_vm14 = vcmp.eq.f32.partialorder %v418_v55, 0.0 }
 0x3c2   : > { %vm441_vm15 = vcmp.eq.f32.partialorder %v421_v57, inf  ;;  %v444_v13 = vand.u32 2147483648, %v421_v57  ;;  %vm443_vm2 = vcmp.eq.f32.partialorder %v421_v57, 0.0 }
 0x3c4   : > { %v424_v58 = vpop.xlane.xlu0 %423 }
 0x3c5   : > { %vm448_vm3 = vcmp.eq.f32.partialorder %v424_v58, inf  ;;  %v451_v16 = vand.u32 2147483648, %v424_v58  ;;  %vm450_vm5 = vcmp.eq.f32.partialorder %v424_v58, 0.0 }
 0x3ca   : > { %v1642_v50 = vpop.eup %1641 }
 0x3cb   : > { %v426_v51 = vmul.f32 %v1642_v50, %v415_v49 }
 0x3cd   : > { %v428_v52 = vsel %vm427_vm11, %v415_v49, %v426_v51 }
 0x3ce   : > { %v431_v54 = vsel %vm429_vm12, %v430_v53, %v428_v52  ;;  %v1644_v60 = vpop.eup %1643 }
 0x3cf   : > { %v453_v56 = vmax.f32 %v431_v54, 1e-12  ;;  %v433_v63 = vmul.f32 %v1644_v60, %v418_v55 }
 0x3d1   : > { %1645 = vrcp.f32 %v453_v56  ;;  %v435_v3 = vsel %vm434_vm13, %v418_v55, %v433_v63 }
 0x3d2   : > { %1647 = vrsqrt.f32 %v421_v57  ;;  %v438_v8 = vsel %vm436_vm14, %v437_v6, %v435_v3 }
 0x3d3   : > { %1649 = vrsqrt.f32 %v424_v58 }
 0x3de   : > { %v1646_v62 = vpop.eup %1645 }
 0x3df   : > { %v1648_v0 = vpop.eup %1647  ;;  %v458_v1 = vmul.f32 %v1646_v62, %v1875_v25  ;;  %v454_v25 = vmax.f32 %v438_v8, 1e-12 }
 0x3e0   : > { %v440_v4 = vmul.f32 %v1648_v0, %v421_v57  ;;  %v1650_v5 = vpop.eup %1649 }
 0x3e1   : > { %v511_v9 = vmul.f32 %v494_v2, %v458_v1  ;;  %v447_v12 = vmul.f32 %v1650_v5, %v424_v58  ;;  %1651 = vrcp.f32 %v454_v25 }
 0x3e2   : > { %v442_v10 = vsel %vm441_vm15, %v421_v57, %v440_v4 }
 0x3e3   : > { %v445_v14 = vsel %vm443_vm2, %v444_v13, %v442_v10  ;;  %v449_v15 = vsel %vm448_vm3, %v424_v58, %v447_v12 }
 0x3e4   : > { %v455_v17 = vmax.f32 %v445_v14, 1e-12  ;;  %v452_v18 = vsel %vm450_vm5, %v451_v16, %v449_v15 }
 0x3e5   : > { %v456_v19 = vmax.f32 %v452_v18, 1e-12 }
 0x3e6   : > { %1653 = vrcp.f32 %v455_v17 }
 0x3e7   : > { %1655 = vrcp.f32 %v456_v19 }
 0x3ee   : > { %v1652_v22 = vpop.eup %1651 }
 0x3ef   : > { %v460_v23 = vmul.f32 %v1652_v22, %v1886_v27 }
 0x3f1   : > { %v512_v32 = vmul.f32 %v498_v24, %v460_v23  ;;  %v1313_v24 = vld [vmem:[%s2081_s6 + $0x38] sm:$0xff] }
 0x3f3   : > { %v1654_v28 = vpop.eup %1653 }
 0x3f4   : > { %v462_v33 = vmul.f32 %v1654_v28, %v1891_v29  ;;  %v1656_v36 = vpop.eup %1655  ;;  %v506_v29 = vrot.slane %v490_v35, %v1910_v48  ;;  %v1311_v28 = vld [vmem:[%s2081_s6 + $0x28] sm:$0xff]  ;;  %v1308_v35 = vld [vmem:[%s2081_s6 + $0x10] sm:$0xff] }
 0x3f5   : > { %v464_v37 = vmul.f32 %v1656_v36, %v1895_v31  ;;  %v1307_v36 = vld [vmem:[%s2081_s6 + $0x8] sm:$0xff] }
 0x3f6   : > { %v513_v27 = vmul.f32 %v502_v34, %v462_v33  ;;  %v1310_v33 = vld [vmem:[%s2081_s6 + $0x20] sm:$0xff]  ;;  %v1309_v34 = vld [vmem:[%s2081_s6 + $0x18] sm:$0xff] }
 0x3f7   : > { %v514_v40 = vmul.f32 %v506_v29, %v464_v37 }
 0x3fc   : > { %v643_v7 = vpop.permute.xlu1 %642 }
 0x3fd   : > { %1516 = vmatpush3.xpose.msk.msra.mxu1 %vm412_vm1, %v643_v7 }
 0x3fe   : > { %1520 = vmatprep.subr.mxu1 %v1735_v11 }
 0x400   : > { %1518 = vmatmul.mubr.msk.f32.vlgmr.msra.gmra.mxu1 %vm412_vm1, %v511_v9 }
 0x401   : > { %1522 = vmatprep.mubr.msk.f32.mxu1 %vm1741_vm4, %v1735_v11 }
 0x418   : > { %v721_v30 = vpop.permute.xlu0 %720 }
 0x419   : > { %1521 = vmatpush3.xpose.msk.msra.mxu1 %vm412_vm1, %v721_v30 }
 0x41a   : > { %1530 = vmatprep.subr.mxu1 %v1735_v11 }
 0x41c   : > { %v799_v46 = vpop.permute.xlu1 %798  ;;  %1523 = vmatmul.mubr.msk.f32.vlgmr.msra.gmra.mxu1 %vm412_vm1, %v512_v32 }
 0x41d   : > { %1526 = vmatpush3.xpose.msk.msra.mxu0 %vm412_vm1, %v799_v46  ;;  %1532 = vmatprep.mubr.msk.f32.mxu1 %vm1741_vm4, %v1735_v11  ;;  %v1306_v46 = vld [vmem:[%s2081_s6] sm:$0xff] }
 0x41e   : > { %1535 = vmatprep.subr.mxu0 %v1735_v11 }
 0x420   : > { %v877_v39 = vpop.permute.xlu1 %876  ;;  %1528 = vmatmul.mubr.msk.f32.vlgmr.msra.gmra.mxu0 %vm412_vm1, %v513_v27 }
 0x421   : > { %1531 = vmatpush3.xpose.msk.msra.mxu1 %vm412_vm1, %v877_v39  ;;  %1536 = vmatpush3.msra.mxu0 %v385_v38 }
 0x422   : > { %1540 = vmatprep.subr.mxu1 %v1735_v11  ;;  %1537 = vmatprep.mubr.msk.f32.mxu0 %vm1741_vm4, %v1735_v11 }
 0x423   : > { %1545 = vmatprep.subr.mxu0 %v1735_v11 }
 0x424   : > { %1533 = vmatmul.mubr.msk.f32.vlgmr.msra.gmra.mxu1 %vm412_vm1, %v514_v40 }
 0x425   : > { %1542 = vmatprep.mubr.msk.f32.mxu1 %vm1741_vm4, %v1735_v11 }
 0x4c0   : > { %v715_v31 = vpop.f32.mrf.mxu1 }
 0x4c1   : > { %v954_v48 = vsel %vm953_vm6, %v715_v31, -inf }
 0x4c2   : > { %955 = vmax.xlane.f32.xlu0 %v954_v48  ;;  %v1519_v41 = vpop.f32.mrf.mxu1 }
 0x4dc   : > { %v793_v42 = vpop.f32.mrf.mxu1 }
 0x4dd   : > { %v957_v43 = vsel %vm953_vm6, %v793_v42, -inf }
 0x4de   : > { %958 = vmax.xlane.f32.xlu1 %v957_v43  ;;  %v1524_v44 = vpop.f32.mrf.mxu1 }
 0x4e0   : > { %v871_v45 = vpop.f32.mrf.mxu0 }
 0x4e1   : > { %v960_v47 = vsel %vm953_vm6, %v871_v45, -inf }
 0x4e2   : > { %v1529_v49 = vpop.f32.mrf.mxu0  ;;  %961 = vmax.xlane.f32.xlu0 %v960_v47 }
 0x4e4   : > { %v949_v50 = vpop.f32.mrf.mxu1 }
 0x4e5   : > { %v963_v51 = vsel %vm953_vm6, %v949_v50, -inf }
 0x4e6   : > { %964 = vmax.xlane.f32.xlu0 %v963_v51  ;;  %v1534_v52 = vpop.f32.mrf.mxu1 }
 0x4ef   : > { %399 = vrot.lane.b32.xlu1 %v385_v38, %s1737_s8  ;;  %s1487_s8 = sshll.u32 %s1807_s28, 7  ;;  %s1745_s28 = smov [#allocation2]  }
 0x4f0   : > { %s2033_s16 = scalar_lea.hbm %s2082_s7, %s1487_s8  ;;  %s1677_s19 = sshll.u32 %s1745_s28, 4  ;;  %s1678_s19 = int_to_ptr.vmem [resolvable:$false] %s1677_s19 }
 0x54b   : > { %v956_v53 = vpop.xlane.xlu0 %955 }
 0x54c   : > { %v966_v54 = vsub.f32 %v715_v31, %v956_v53 }
 0x54e   : > { %v970_v55 = vmul.f32 1.442695, %v966_v54 }
 0x550   : > { %1657 = vpow2.f32 %v970_v55 }
 0x55d   : > { %v1658_v56 = vpop.eup %1657 }
 0x55e   : > { %v978_v57 = vsel %vm953_vm6, %v1658_v56, 0.0 }
 0x55f   : > { %979 = vadd.xlane.f32.xlu1 %v978_v57 }
 0x567   : > { %v959_v58 = vpop.xlane.xlu1 %958 }
 0x568   : > { %v967_v59 = vsub.f32 %v793_v42, %v959_v58 }
 0x56a   : > { %v972_v60 = vmul.f32 1.442695, %v967_v59 }
 0x56b   : > { %v962_v61 = vpop.xlane.xlu0 %961  ;;  %v400_v62 = vpop.permute.xlu1 %399 }
 0x56c   : > { %1659 = vpow2.f32 %v972_v60  ;;  %v968_v63 = vsub.f32 %v871_v45, %v962_v61  ;;  %1541 = vmatpush3.msra.mxu1 %v400_v62 }
 0x56d   : > { %1550 = vmatprep.subr.mxu1 %v1735_v11 }
 0x56e   : > { %v974_v0 = vmul.f32 1.442695, %v968_v63 }
 0x56f   : > { %v965_v1 = vpop.xlane.xlu0 %964 }
 0x570   : > { %1661 = vpow2.f32 %v974_v0  ;;  %v969_v2 = vsub.f32 %v949_v50, %v965_v1 }
 0x572   : > { %v976_v3 = vmul.f32 1.442695, %v969_v2 }
 0x574   : > { %1663 = vpow2.f32 %v976_v3 }
 0x579   : > { %v1660_v4 = vpop.eup %1659 }
 0x57a   : > { %v981_v5 = vsel %vm953_vm6, %v1660_v4, 0.0 }
 0x57b   : > { %982 = vadd.xlane.f32.xlu0 %v981_v5 }
 0x57d   : > { %v1662_v6 = vpop.eup %1661 }
 0x57e   : > { %v984_v7 = vsel %vm953_vm6, %v1662_v6, 0.0 }
 0x57f   : > { %985 = vadd.xlane.f32.xlu1 %v984_v7 }
 0x581   : > { %v1664_v8 = vpop.eup %1663 }
 0x582   : > { %v987_v9 = vsel %vm953_vm6, %v1664_v8, 0.0 }
 0x583   : > { %988 = vadd.xlane.f32.xlu0 %v987_v9 }
 0x590   : > { %405 = vrot.lane.b32.xlu1 %v385_v38, %s1736_s29  ;;  %s1466_s29 = sshll.u32 %s267_s23, 3 }
 0x599   : > { %402 = vrot.lane.b32.xlu0 %v385_v38, %s1738_s9  ;;  %s269_s9 = scalar_lea.vmem [#allocation2], %s1466_s29 }
 0x59a   : > { %s1403_s13 = sshll.u32 %s269_s9, 4  ;;  %s2035_s13 = int_to_ptr.vmem [resolvable:$true] %s1403_s13 }
 0x59b   : > { %s1673_s18 = scalar_lea.vmem %s2035_s13, 128  ;;  %p1680_p0 = scmp.lt.s32.totalorder %s2035_s13, %s1678_s19 }
 0x59c   : > { %p1674_p11 = scmp.ne.s32.totalorder %s2035_s13, %s1673_s18 }
 0x59e   : > { %p1675_p12 = pnand %p1674_p11, %p1824_p5 }
 0x5a0   : > { %p1676_p13 = pneg %p1675_p12 }
 0x5e8   : > { %v980_v10 = vpop.xlane.xlu1 %979 }
 0x5e9   : > { %1665 = vrcp.f32 %v980_v10 }
 0x5f6   : > { %v1666_v12 = vpop.eup %1665 }
 0x5f7   : > { %v994_v13 = vmul.f32 %v1666_v12, %v1658_v56 }
 0x5f9   : > { %1538 = vmatmul.mubr.msk.f32.vlgmr.msra.gmra.mxu0 %vm953_vm6, %v994_v13 }
 0x5fa   : > { %1547 = vmatprep.mubr.msk.f32.mxu0 %vm1741_vm4, %v1735_v11 }
 0x604   : > { %v983_v25 = vpop.xlane.xlu0 %982 }
 0x605   : > { %1667 = vrcp.f32 %v983_v25 }
 0x608   : > { %v986_v14 = vpop.xlane.xlu1 %985 }
 0x609   : > { %1669 = vrcp.f32 %v986_v14 }
 0x60c   : > { %v989_v15 = vpop.xlane.xlu0 %988  ;;  %v406_v19 = vpop.permute.xlu1 %405 }
 0x60d   : > { %1671 = vrcp.f32 %v989_v15 }
 0x610   : > { %v403_v16 = vpop.permute.xlu0 %402 }
 0x611   : > { %1546 = vmatpush3.msra.mxu0 %v403_v16 }
 0x612   : > { %v1668_v17 = vpop.eup %1667  ;;  %1555 = vmatprep.subr.mxu0 %v1735_v11 }
 0x613   : > { %v995_v18 = vmul.f32 %v1668_v17, %v1660_v4 }
 0x615   : > { %1543 = vmatmul.mubr.msk.f32.vlgmr.msra.gmra.mxu1 %vm953_vm6, %v995_v18 }
 0x616   : > { %v1670_v20 = vpop.eup %1669  ;;  %1551 = vmatpush3.msra.mxu1 %v406_v19  ;;  %1552 = vmatprep.mubr.msk.f32.mxu1 %vm1741_vm4, %v1735_v11 }
 0x617   : > { %v996_v21 = vmul.f32 %v1670_v20, %v1662_v6 }
 0x619   : > { %1548 = vmatmul.mubr.msk.f32.vlgmr.msra.gmra.mxu0 %vm953_vm6, %v996_v21 }
 0x61a   : > { %v1672_v22 = vpop.eup %1671  ;;  %1571 = vmatprep.mubr.msk.f32.mxu0 %vm1741_vm4, %v1735_v11  ;;  %1556 = vmatpush3.msra.mxu0 %v1313_v24  ;;  %vm1304_vm4 = vcmask 392192  }
 0x61b   : > { %v997_v23 = vmul.f32 %v1672_v22, %v1664_v8  ;;  %1557 = vmatprep.subr.mxu0 %v1735_v11 }
 0x61c   : > { %1558 = vmatpush3.msra.mxu0 %v1312_v26 }
 0x61d   : > { %1553 = vmatmul.mubr.msk.f32.vlgmr.msra.gmra.mxu1 %vm953_vm6, %v997_v23  ;;  %1559 = vmatprep.subr.mxu0 %v1735_v11 }
 0x61e   : > { %1560 = vmatpush3.msra.mxu0 %v1311_v28 }
 0x61f   : > { %1561 = vmatprep.subr.mxu0 %v1735_v11 }
 0x620   : > { %1562 = vmatpush3.msra.mxu0 %v1310_v33 }
 0x621   : > { %1563 = vmatprep.subr.mxu0 %v1735_v11 }
 0x622   : > { %1564 = vmatpush3.msra.mxu0 %v1309_v34 }
 0x623   : > { %1565 = vmatprep.subr.mxu0 %v1735_v11 }
 0x624   : > { %1566 = vmatpush3.msra.mxu0 %v1308_v35 }
 0x625   : > { %1567 = vmatprep.subr.mxu0 %v1735_v11 }
 0x626   : > { %1568 = vmatpush3.msra.mxu0 %v1307_v36 }
 0x627   : > { %1569 = vmatprep.subr.mxu0 %v1735_v11 }
 0x628   : > { %1570 = vmatpush3.msra.mxu0 %v1306_v46 }
 0x6b9   : > { %v1067_v30 = vpop.f32.mrf.mxu0 }
 0x6bb   : > { %v1539_v32 = vpop.f32.mrf.mxu0 }
 0x6d5   : > { %v1140_v27 = vpop.f32.mrf.mxu1 }
 0x6d6   : > { %1291 = vrot.lane.b32.xlu1 %v1140_v27, %s1742_s20  ;;  %s1679_s20 = scalar_lea.vmem %s1678_s19, 256 }
 0x6d7   : > { %v1544_v37 = vpop.f32.mrf.mxu1  ;;  %p1681_p1 = scmp.lt.s32.totalorder %s1679_s20, %s1673_s18 }
 0x6d9   : > { %v1213_v29 = vpop.f32.mrf.mxu0  ;;  %p1682_p2 = por %p1681_p1, %p1680_p0 }
 0x6da   : > { %1295 = vrot.lane.b32.xlu0 %v1213_v29, %s1743_s21 }
 0x6db   : > { %v1549_v38 = vpop.f32.mrf.mxu0  ;;  %p1683_p3 = pnand %p1682_p2, %p1676_p13 }
 0x6dd   : > { %v1286_v39 = vpop.f32.mrf.mxu1 }
 0x6de   : > { %1299 = vrot.lane.b32.xlu1 %v1286_v39, %s1744_s22 }
 0x6df   : > { %v1554_v40 = vpop.f32.mrf.mxu1 }
 0x748   : > { %v1292_v11 = vpop.permute.xlu1 %1291 }
 0x749   : > { %v1302_v48 = vsel %vm412_vm1, %v1067_v30, %v1292_v11 }
 0x74c   : > { %v1296_v31 = vpop.permute.xlu0 %1295 }
 0x74d   : > { %v1303_v41 = vsel %vm275_vm0, %v1302_v48, %v1296_v31 }
 0x750   : > { %v1300_v42 = vpop.permute.xlu1 %1299 }
 0x751   : > { %v1305_v43 = vsel %vm1304_vm4, %v1303_v41, %v1300_v42 }
 0x752   : > { %1572 = vmatmul.mubr.msk.f32.vlgmr.msra.gmra.mxu0 %vm1314_vm7, %v1305_v43 }
 0x812   : > { %v1384_v44 = vpop.f32.mrf.mxu0 }
 0x813   : > { %1388 = vst.msk [vmem:[%s269_s9] sm:$0xff] %vm275_vm0, %v1384_v44 }
 0x814   : > { %v1573_v45 = vpop.f32.mrf.mxu0 }
 0x815   : > { %1686 = shalt.err (!%p1683_p3)
}
 0x816   : > { %s1687_s21 = scalar_lea.hbm %s2033_s16, 128  ;;  %s1691_s29 = scalar_lea.hbm %s2082_s7, 256 }
 0x817   : > { %p1688_p4 = scmp.ne.s32.totalorder %s2033_s16, %s1687_s21  ;;  %p1692_p9 = scmp.lt.s32.totalorder %s2033_s16, %s2082_s7 }
 0x818   : > { %p1693_p10 = scmp.lt.s32.totalorder %s1691_s29, %s1687_s21 }
 0x819   : > { %p1689_p7 = pnand %p1688_p4, %p1824_p5 }
 0x81a   : > { %p1694_p11 = por %p1693_p10, %p1692_p9 }
 0x81b   : > { %p1690_p8 = pneg %p1689_p7 }
 0x81d   : > { %p1695_p12 = pnand %p1694_p11, %p1690_p8 }
 0x81f   : > { %1698 = shalt.err (!%p1695_p12)
}
 0x820   : > { %1574 = dma.vmem_to_hbm [thread:$0]  (%p1824_p5), %s2035_s13, 128, %s2033_s16, %s1390_s17  }
 0x821 PF: > { %p1580_p13 = scmp.ge.s32.totalorder %s1733_s27, 2  ;;  %s1415_s14 = sand.u32 1, %s1721_s24  }
 0x822   : > { %s1416_s15 = scalar_lea.sflag [#allocation3], %s1415_s14 }
 0x823   : > { %p1577_p0 = pnand %p1580_p13, %p1828_p6 }
 0x825   : > { %p1578_p1 = pneg %p1577_p0 }
 0x827   : > { %1716 = dma.done.wait (%p1578_p1), %s1416_s15, 128  }
 0x828   : > { %1718 = vsyncadd (%p1578_p1), %s1416_s15, 4294967168  ;;  %p17_p2 = scmp.ge.s32.totalorder %s1811_s30, 4   ;;  %s2085_s24 = smov %s1725_s25 }
 0x829   : > { %s2086_s25 = smov %s1729_s26  ;;  %s2087_s26 = smov %s1822_s10 }
 0x82a   : > { %s2088_s27 = smov %s1811_s30  ;;  %19 = sbr.rel (!%p17_p2) target bundleno = 3 (0x3), region = 83 }
 0x82f   :  { %1421 = vsyncpa [#allocation3], 1 }
 0x830   :  { %1423 = vsyncpa [#allocation3 + $0x1], 1 }

</bundles_post_ra>
